<compile_context>
chip_gen: v7x
topology: tpu7x:2x2x1
jax: 0.10.0
libtpu: 0.0.40
codegen_flags: <defaults>
</compile_context>

<pallas_src>
import functools

import jax
import jax.numpy as jnp
from jax import lax
from jax.experimental import pallas as pl
from jax.experimental.pallas import tpu as pltpu

LANES = 128
SUB = 8


def _round_up(x, m):
    return (x + m - 1) // m * m


def _vmem_capacity_bytes():
    """Generation-aware VMEM capacity with a conservative fallback."""
    try:
        info = pltpu.get_tpu_info()
        cap = getattr(info, "vmem_capacity_bytes", None)
        if cap:
            return int(cap)
    except Exception:
        pass
    return 64 << 20            # v7x-sized fallback (safe lower bound)


# ----------------------------- kernel bodies --------------------------------

def _tile_loss(x_ref, t_ref, beta, c1, c2):
    """Smooth-L1 loss for one (rt, 128) tile, computed in f32 (VPU only)."""
    x = x_ref[...].astype(jnp.float32)
    t = t_ref[...].astype(jnp.float32)
    n = jnp.abs(x - t)
    return jnp.where(n < beta, (n * n) * c1, n - c2)


def _mask_tail_rows(loss, rt, rows_valid):
    """Zero rows of the ragged last block that lie past the real array."""
    base = pl.program_id(0) * rt
    rid = base + lax.broadcasted_iota(jnp.int32, (rt, 1), 0)
    return jnp.where(rid < rows_valid, loss, 0.0)


def _fold_rows(loss, rt):
    """(rt, 128) -> (8, 128) partial sum: pure vreg adds, no XLU, no scratch."""
    if rt == SUB:
        return loss
    return jnp.sum(loss.reshape(rt // SUB, SUB, LANES), axis=0)


def _smooth_l1_weighted_kernel(x_ref, t_ref, w_ref, o_ref, *,
                               beta, c1, c2, rt, rows_valid, mask_tail):
    loss = _tile_loss(x_ref, t_ref, beta, c1, c2)
    loss = loss * w_ref[...].astype(jnp.float32)   # (rt,1) or (rt,128) broadcast
    if mask_tail:
        loss = _mask_tail_rows(loss, rt, rows_valid)
    o_ref[...] = _fold_rows(loss, rt)


def _smooth_l1_plain_kernel(x_ref, t_ref, o_ref, *,
                            beta, c1, c2, rt, rows_valid, mask_tail):
    loss = _tile_loss(x_ref, t_ref, beta, c1, c2)
    if mask_tail:
        loss = _mask_tail_rows(loss, rt, rows_valid)
    o_ref[...] = _fold_rows(loss, rt)


# ------------------------------- wrapper -------------------------------------

def smooth_l1_loss_weight(inp, target, weight=None, beta=1.0 / 9,
                          block_rows=None):
    """JAX/Pallas equivalent of the PyTorch module's forward pass."""
    assert inp.shape == target.shape and inp.ndim == 2
    N, D = inp.shape
    total = N * D
    assert total != 0                       # mirrors `assert loss.numel() != 0`

    beta = float(beta)
    c1 = (0.5 / beta) if beta > 0 else 0.0  # 0.5 / beta  (unused when beta == 0)
    c2 = 0.5 * beta

    # ---- packed lane-dense layout (R, 128), minimal remainder pad ---------
    padded_total = _round_up(total, SUB * LANES)
    pad = padded_total - total
    R = padded_total // LANES               # packed rows; always a multiple of 8

    x = inp.reshape(total)                  # row-major flatten: free bitcast
    t = target.reshape(total)
    if pad:                                 # only when N*D % 1024 != 0
        x = jnp.pad(x, (0, pad))            # padded zeros contribute exactly 0
        t = jnp.pad(t, (0, pad))
    x = x.reshape(R, LANES)
    t = t.reshape(R, LANES)

    weighted = weight is not None
    if weighted:
        # torch branch: weighted sum if weight.sum() > 0 else plain sum.
        w_eff = jnp.where(jnp.sum(weight) > 0,
                          weight.astype(jnp.float32),
                          jnp.ones((N,), jnp.float32))
        if D % LANES == 0:
            # One weight per packed 128-lane row -> tiny (R, 1) stream.
            w_arr = jnp.repeat(w_eff, D // LANES)
            extra = R - N * (D // LANES)
            if extra:
                w_arr = jnp.pad(w_arr, (0, extra))
            w_arr = w_arr.reshape(R, 1)
            w_last = 1
            w_bytes = R * 4
        else:
            # Per-element weight stream for the packed small-D layout.
            w_arr = jnp.repeat(w_eff, D)
            if pad:
                w_arr = jnp.pad(w_arr, (0, pad))
            w_arr = w_arr.reshape(R, LANES)
            w_last = LANES
            w_bytes = total * 4
    else:
        w_bytes = 0

    # ---- tile size from a VMEM byte budget (all Python ints) --------------
    item = max(inp.dtype.itemsize, target.dtype.itemsize)
    vmem_cap = _vmem_capacity_bytes()
    budget = min(28 << 20, max(8 << 20, vmem_cap // 2 - (8 << 20)))
    per_row = 2 * 2 * LANES * item                  # x, t double-buffered
    if weighted:
        per_row += 2 * LANES * 4                    # weight blocks (lane-padded)
    per_row += 6 * LANES * 4                        # in-kernel f32 temporaries
    rt_cap = max(SUB, (budget // per_row) // SUB * SUB)
    rt_target = max(SUB, ((2 << 20) // (LANES * item)) // SUB * SUB)  # ~2 MiB/block
    rt = min(rt_cap, rt_target, R)
    if block_rows is not None:                       # test / tuning override
        rt = min(rt, max(SUB, int(block_rows) // SUB * SUB))
    n_blocks = -(-R // rt)
    mask_tail = (R % rt) != 0
    vmem_limit = int(min(max(2 * rt * per_row, 16 << 20), 40 << 20))

    # ---- specs --------------------------------------------------------------
    in_specs = [pl.BlockSpec((rt, LANES), lambda i: (i, 0)),
                pl.BlockSpec((rt, LANES), lambda i: (i, 0))]
    operands = [x, t]
    if weighted:
        in_specs.append(pl.BlockSpec((rt, w_last), lambda i: (i, 0)))
        operands.append(w_arr)
        kernel = functools.partial(_smooth_l1_weighted_kernel, beta=beta,
                                   c1=c1, c2=c2, rt=rt, rows_valid=R,
                                   mask_tail=mask_tail)
    else:
        kernel = functools.partial(_smooth_l1_plain_kernel, beta=beta,
                                   c1=c1, c2=c2, rt=rt, rows_valid=R,
                                   mask_tail=mask_tail)

    in_bytes = total * (inp.dtype.itemsize + target.dtype.itemsize)
    cost = pl.CostEstimate(flops=9 * total, transcendentals=0,
                           bytes_accessed=in_bytes + w_bytes
                           + n_blocks * SUB * LANES * 4)

    out = pl.pallas_call(
        kernel,
        out_shape=jax.ShapeDtypeStruct((n_blocks * SUB, LANES), jnp.float32),
        grid=(n_blocks,),
        in_specs=in_specs,
        out_specs=pl.BlockSpec((SUB, LANES), lambda i: (i, 0)),
        compiler_params=pltpu.CompilerParams(
            dimension_semantics=("parallel",),      # megacore-shardable on v7x
            vmem_limit_bytes=vmem_limit),
        cost_estimate=cost,
    )(*operands)

    # Tiny cross-block / cross-lane reduce in XLA.
    return jnp.sum(out)


# ------------------------------- reference -----------------------------------

def _reference(inp, target, weight=None, beta=1.0 / 9):
    n = jnp.abs(inp - target)
    loss = jnp.where(n < beta, 0.5 * n * n / beta, n - 0.5 * beta)
    if weight is not None:
        return jnp.where(jnp.sum(weight) > 0,
                         jnp.sum(loss * weight[:, None]),
                         jnp.sum(loss))
    return jnp.sum(loss)


if __name__ == "__main__":
    key = jax.random.PRNGKey(0)
    k1, k2, k3, k4, k5, k6, k7, k8, k9 = jax.random.split(key, 9)

    # IENet-style box regression: ragged N, tiny D=4 (packed lane-dense path).
    N1, D1 = 22, 4
    x1 = jax.random.normal(k1, (N1, D1), dtype=jnp.float32)
    t1 = jax.random.normal(k2, (N1, D1), dtype=jnp.float32)
    w1 = jax.random.uniform(k3, (N1,), dtype=jnp.float32)

    out_w = jax.block_until_ready(smooth_l1_loss_weight(x1, t1, w1))
    ref_w = _reference(x1, t1, w1)
    assert jnp.allclose(out_w, ref_w, rtol=1e-5, atol=1e-5), (out_w, ref_w)

    out_u = jax.block_until_ready(smooth_l1_loss_weight(x1, t1, None))
    ref_u = _reference(x1, t1, None)
    assert jnp.allclose(out_u, ref_u, rtol=1e-5, atol=1e-5), (out_u, ref_u)

    # weight.sum() == 0  ->  falls back to plain sum (matches the torch branch).
    w0 = jnp.zeros((N1,), dtype=jnp.float32)
    out_0 = jax.block_until_ready(smooth_l1_loss_weight(x1, t1, w0))
    assert jnp.allclose(out_0, ref_u, rtol=1e-5, atol=1e-5), (out_0, ref_u)

    # bf16 case, D multiple of 128: per-packed-row (R,1) weight stream.
    N2, D2 = 1024, 128
    x2 = jax.random.normal(k4, (N2, D2), dtype=jnp.bfloat16)
    t2 = jax.random.normal(k5, (N2, D2), dtype=jnp.bfloat16)
    w2 = jax.random.uniform(k6, (N2,), dtype=jnp.float32)
    out_b = jax.block_until_ready(smooth_l1_loss_weight(x2, t2, w2))
    ref_b = _reference(x2.astype(jnp.float32), t2.astype(jnp.float32), w2)
    assert jnp.allclose(out_b, ref_b, rtol=2e-3, atol=1e-2), (out_b, ref_b)

    # f32, D=256 (exercises remainder pad + per-packed-row weight expansion).
    N3, D3 = 50, 256
    x3 = jax.random.normal(k7, (N3, D3), dtype=jnp.float32)
    t3 = jax.random.normal(k8, (N3, D3), dtype=jnp.float32)
    w3 = jax.random.uniform(k9, (N3,), dtype=jnp.float32)
    out_3 = jax.block_until_ready(smooth_l1_loss_weight(x3, t3, w3))
    ref_3 = _reference(x3, t3, w3)
    assert jnp.allclose(out_3, ref_3, rtol=1e-5, atol=1e-5), (out_3, ref_3)

    # Forced small block_rows: multi-block grid with a ragged, in-kernel-masked
    # tail (weighted per-element and unweighted paths).
    N4, D4 = 600, 4
    x4 = jax.random.normal(k1, (N4, D4), dtype=jnp.float32)
    t4 = jax.random.normal(k2, (N4, D4), dtype=jnp.float32)
    w4 = jax.random.uniform(k3, (N4,), dtype=jnp.float32)
    out_4w = jax.block_until_ready(
        smooth_l1_loss_weight(x4, t4, w4, block_rows=16))
    ref_4w = _reference(x4, t4, w4)
    assert jnp.allclose(out_4w, ref_4w, rtol=1e-5, atol=1e-5), (out_4w, ref_4w)
    out_4u = jax.block_until_ready(
        smooth_l1_loss_weight(x4, t4, None, block_rows=16))
    ref_4u = _reference(x4, t4, None)
    assert jnp.allclose(out_4u, ref_4u, rtol=1e-5, atol=1e-5), (out_4u, ref_4u)

    print("KERNEL_OK")
</pallas_src>

<mosaic_0001>
module attributes {stable_mosaic.version = 11 : i64} {
  func.func @_smooth_l1_weighted_kernel(%arg0: i32, %arg1: memref<8x128xf32, #tpu.memory_space<vmem>>, %arg2: memref<8x128xf32, #tpu.memory_space<vmem>>, %arg3: memref<8x128xf32, #tpu.memory_space<vmem>>, %arg4: memref<8x128xf32, #tpu.memory_space<vmem>>) attributes {dimension_semantics = [#tpu.dimension_semantics<parallel>], iteration_bounds = array<i64: 1>, scalar_prefetch = 0 : i64, scratch_operands = 0 : i64, tpu.core_type = #tpu.core_type<tc>, window_params = [{transform_indices = @transform_0, window_bounds = array<i64: 8, 128>}, {transform_indices = @transform_1, window_bounds = array<i64: 8, 128>}, {transform_indices = @transform_2, window_bounds = array<i64: 8, 128>}, {transform_indices = @transform_3, window_bounds = array<i64: 8, 128>}]} {
    %c0 = arith.constant 0 : index
    %c0_0 = arith.constant 0 : index
    %0 = vector.load %arg1[%c0, %c0_0] : memref<8x128xf32, #tpu.memory_space<vmem>>, vector<8x128xf32>
    %c0_1 = arith.constant 0 : index
    %c0_2 = arith.constant 0 : index
    %1 = vector.load %arg2[%c0_1, %c0_2] : memref<8x128xf32, #tpu.memory_space<vmem>>, vector<8x128xf32>
    %2 = arith.subf %0, %1 : vector<8x128xf32>
    %3 = math.absf %2 : vector<8x128xf32>
    %cst = arith.constant 0.111111112 : f32
    %4 = vector.broadcast %cst : f32 to vector<8x128xf32>
    %5 = arith.cmpf olt, %3, %4 : vector<8x128xf32>
    %6 = arith.mulf %3, %3 : vector<8x128xf32>
    %cst_3 = arith.constant 4.500000e+00 : f32
    %7 = vector.broadcast %cst_3 : f32 to vector<8x128xf32>
    %8 = arith.mulf %6, %7 : vector<8x128xf32>
    %cst_4 = arith.constant 0.055555556 : f32
    %9 = vector.broadcast %cst_4 : f32 to vector<8x128xf32>
    %10 = arith.subf %3, %9 : vector<8x128xf32>
    %11 = arith.select %5, %8, %10 : vector<8x128xi1>, vector<8x128xf32>
    %c0_5 = arith.constant 0 : index
    %c0_6 = arith.constant 0 : index
    %12 = vector.load %arg3[%c0_5, %c0_6] : memref<8x128xf32, #tpu.memory_space<vmem>>, vector<8x128xf32>
    %13 = arith.mulf %11, %12 : vector<8x128xf32>
    %c0_7 = arith.constant 0 : index
    %c0_8 = arith.constant 0 : index
    %14 = vector.load %arg4[%c0_7, %c0_8] : memref<8x128xf32, #tpu.memory_space<vmem>>, vector<8x128xf32>
    tpu.vector_store %arg4[%c0_7, %c0_8], %13 {strides = array<i32>} : memref<8x128xf32, #tpu.memory_space<vmem>>, vector<8x128xf32>,
    return
  }
  func.func @transform_0(%arg0: i32) -> (i32, i32) {
    %c0_i32 = arith.constant 0 : i32
    %c0_i32_0 = arith.constant 0 : i32
    return %arg0, %c0_i32 : i32, i32
  }
  func.func @transform_1(%arg0: i32) -> (i32, i32) {
    %c0_i32 = arith.constant 0 : i32
    %c0_i32_0 = arith.constant 0 : i32
    return %arg0, %c0_i32 : i32, i32
  }
  func.func @transform_2(%arg0: i32) -> (i32, i32) {
    %c0_i32 = arith.constant 0 : i32
    %c0_i32_0 = arith.constant 0 : i32
    return %arg0, %c0_i32 : i32, i32
  }
  func.func @transform_3(%arg0: i32) -> (i32, i32) {
    %c0_i32 = arith.constant 0 : i32
    %c0_i32_0 = arith.constant 0 : i32
    return %arg0, %c0_i32 : i32, i32
  }
}

</mosaic_0001>

<bundles_post_ra>
// kernel: tpu_custom_call.1
= control target key start
LH: loop header
LB: loop body
LE: loop exit
PB: predicated region body
PF: predicated region fallthrough
CT: control target
= control target key end

     0   :  { %8 = vsyncpa [#allocation3], 0  ;;  %s249_s0 = inlined_call_operand.hbm [shape: f32[8,128], index: 0, kind: input, shape index: {}]   ;;  %s250_s1 = inlined_call_operand.hbm [shape: f32[8,128], index: 1, kind: input, shape index: {}]   ;;  %s251_s2 = inlined_call_operand.hbm [shape: f32[8,128], index: 2, kind: input, shape index: {}]   ;;  %s252_s3 = inlined_call_operand.hbm [shape: f32[8,128], index: 3, kind: output, shape index: {}]  }
   0x1   :  { %9 = vsyncpa [#allocation6], 0 }
   0x2   :  { %10 = vsyncpa [#allocation4], 0  ;;  %s177_s12 = smov [#allocation5]   ;;  %s178_s14 = smov [#allocation2]  }
   0x3   :  { %s27_s13 = sshll.u32 %s177_s12, 4  ;;  %s17_s15 = sshll.u32 %s178_s14, 4  ;;  %s28_s13 = int_to_ptr.vmem [resolvable:$true] %s27_s13  ;;  %s18_s15 = int_to_ptr.vmem [resolvable:$true] %s17_s15 }
   0x4   :  { %s83_s18 = scalar_lea.hbm %s250_s1, 128 }
   0x5   :  { %p84_p0 = scmp.ne.s32.totalorder %s250_s1, %s83_s18  ;;  %p87_p1 = scmp.lt.u32.totalorder %s83_s18, %s250_s1 }
   0x7   :  { %p89_p2 = pnand %p87_p1, %p84_p0 }
   0x9   :  { %92 = shalt.err (!%p89_p2)
}
   0xa   :  { %s93_s23 = scalar_lea.vmem %s28_s13, 128  ;;  %p98_p4 = scmp.lt.s32.totalorder %s28_s13, %s28_s13 }
   0xb   :  { %p94_p3 = scmp.ne.s32.totalorder %s28_s13, %s93_s23  ;;  %p99_p5 = scmp.lt.s32.totalorder %s93_s23, %s93_s23 }
   0xd   :  { %p100_p6 = por %p99_p5, %p98_p4 }
   0xf   :  { %p101_p7 = pnand %p100_p6, %p94_p3 }
  0x11   :  { %104 = shalt.err (!%p101_p7)
}
  0x12   :  { %30 = dma.hbm_to_vmem [thread:$0]  %s250_s1, 128, %s28_s13, [#allocation6]  }
  0x13   :  { %s105_s28 = scalar_lea.hbm %s249_s0, 128 }
  0x14   :  { %p106_p8 = scmp.ne.s32.totalorder %s249_s0, %s105_s28  ;;  %p109_p9 = scmp.lt.u32.totalorder %s105_s28, %s249_s0 }
  0x16   :  { %p111_p10 = pnand %p109_p9, %p106_p8 }
  0x18   :  { %114 = shalt.err (!%p111_p10)
}
  0x19   :  { %s115_s6 = scalar_lea.vmem %s18_s15, 128  ;;  %p120_p12 = scmp.lt.s32.totalorder %s18_s15, %s18_s15 }
  0x1a   :  { %p116_p11 = scmp.ne.s32.totalorder %s18_s15, %s115_s6  ;;  %p121_p13 = scmp.lt.s32.totalorder %s115_s6, %s115_s6 }
  0x1c   :  { %p122_p0 = por %p121_p13, %p120_p12 }
  0x1e   :  { %p123_p1 = pnand %p122_p0, %p116_p11 }
  0x20   :  { %126 = shalt.err (!%p123_p1)
}
  0x21   :  { %20 = dma.hbm_to_vmem [thread:$0]  %s249_s0, 128, %s18_s15, [#allocation3]  }
  0x22   :  { %s179_s8 = smov [#allocation7]   ;;  %s127_s12 = scalar_lea.hbm %s251_s2, 128 }
  0x23   :  { %s37_s9 = sshll.u32 %s179_s8, 4  ;;  %p128_p2 = scmp.ne.s32.totalorder %s251_s2, %s127_s12  ;;  %s38_s9 = int_to_ptr.vmem [resolvable:$true] %s37_s9 }
  0x24   :  { %p131_p3 = scmp.lt.u32.totalorder %s127_s12, %s251_s2 }
  0x26   :  { %p133_p4 = pnand %p131_p3, %p128_p2 }
  0x28   :  { %136 = shalt.err (!%p133_p4)
}
  0x29   :  { %s137_s18 = scalar_lea.vmem %s38_s9, 128  ;;  %p142_p6 = scmp.lt.s32.totalorder %s38_s9, %s38_s9 }
  0x2a   :  { %p138_p5 = scmp.ne.s32.totalorder %s38_s9, %s137_s18  ;;  %p143_p7 = scmp.lt.s32.totalorder %s137_s18, %s137_s18 }
  0x2c   :  { %p144_p8 = por %p143_p7, %p142_p6 }
  0x2e   :  { %p145_p9 = pnand %p144_p8, %p138_p5 }
  0x30   :  { %148 = shalt.err (!%p145_p9)
}
  0x31   :  { %40 = dma.hbm_to_vmem [thread:$0]  %s251_s2, 128, %s38_s9, [#allocation6]  }
  0x32   :  { %171 = dma.done.wait [#allocation3], 128  }
  0x33   :  { %172 = vsyncadd [#allocation3], 4294967168 }
  0x34   :  { %173 = dma.done.wait [#allocation6], 256  }
  0x35   :  { %174 = vsyncadd [#allocation6], 4294967040  ;;  %v50_v0 = vld [vmem:[#allocation2] sm:$0xff]  ;;  %v51_v1 = vld [vmem:[#allocation5] sm:$0xff]  ;;  %s180_s19 = smov [#allocation8]  }
  0x36   :  { %v52_v2 = vsub.f32 %v50_v0, %v51_v1  ;;  %v59_v7 = vld [vmem:[#allocation7] sm:$0xff]  ;;  %s68_s20 = sshll.u32 %s180_s19, 4  ;;  %s69_s20 = int_to_ptr.vmem [resolvable:$true] %s68_s20 }
  0x37   :  { %s149_s2 = scalar_lea.vmem %s69_s20, 128  ;;  %p154_p11 = scmp.lt.s32.totalorder %s69_s20, %s69_s20 }
  0x38   :  { %v53_v3 = vand.u32 2147483647, %v52_v2  ;;  %p150_p10 = scmp.ne.s32.totalorder %s69_s20, %s149_s2  ;;  %p155_p12 = scmp.lt.s32.totalorder %s149_s2, %s149_s2 }
  0x3a   :  { %v55_v4 = vmul.f32 %v53_v3, %v53_v3  ;;  %v78_v5 = vadd.f32 -0.055555556, %v53_v3  ;;  %vm54_vm0 = vcmp.lt.f32.partialorder %v53_v3, 0.11111111  ;;  %p156_p13 = por %p155_p12, %p154_p11 }
  0x3c   :  { %v56_v6 = vmul.f32 4.5, %v55_v4  ;;  %p157_p0 = pnand %p156_p13, %p150_p10 }
  0x3e   :  { %v58_v8 = vsel %vm54_vm0, %v56_v6, %v78_v5 }
  0x3f   :  { %v60_v9 = vmul.f32 %v59_v7, %v58_v8 }
  0x41   :  { %61 = vst [vmem:[#allocation8] sm:$0xff] %v60_v9 }
  0x42   :  { %160 = shalt.err (!%p157_p0)
}
  0x43   :  { %s161_s23 = scalar_lea.hbm %s252_s3, 128 }
  0x44   :  { %p162_p1 = scmp.ne.s32.totalorder %s252_s3, %s161_s23  ;;  %p165_p2 = scmp.lt.u32.totalorder %s161_s23, %s252_s3 }
  0x46   :  { %p167_p3 = pnand %p165_p2, %p162_p1 }
  0x48   :  { %170 = shalt.err (!%p167_p3)
}
  0x49   :  { %71 = dma.vmem_to_hbm [thread:$0]  %s69_s20, 128, %s252_s3, [#allocation4]  }
  0x4a   :  { %175 = dma.done.wait [#allocation4], 128  }
  0x4b   :  { %176 = vsyncadd [#allocation4], 4294967168 }
  0x4c   :  { %75 = vsyncpa [#allocation3], 1 }
  0x4d   :  { %76 = vsyncpa [#allocation6], 1 }
  0x4e   :  { %77 = vsyncpa [#allocation4], 1 }

</bundles_post_ra>
